<compile_context>
chip_gen: v7x
topology: tpu7x:2x2x1
jax: 0.10.0
libtpu: 0.0.40
codegen_flags: <defaults>
</compile_context>

<pallas_src>
import jax
import jax.numpy as jnp
import numpy as np
from jax.experimental import pallas as pl
from jax.experimental.pallas import tpu as pltpu


# ----------------------------- Pallas kernel ------------------------------- #

def fused_gat_kernel(x_ref, adj_ref, a_ref, w_gat_ref, b_gat_ref,
                     w_fc_ref, b_fc_ref, out_ref, prob_ref):
    """Per-batch fused graph attention + graph-message fusion.

    x_ref    : (1, N, Fin)        node features (all heads packed on lanes)
    adj_ref  : (1, N, N)          adjacency (used only for the fusion branch)
    a_ref    : (Fin, 2H)          block-structured [A_i | A_j] attention vecs
    w_gat_ref: (H*Din, H*Dout)    block-diagonal per-head GAT fc weight
    b_gat_ref: (1, H*Dout)        GAT fc bias tiled over heads
    w_fc_ref : (Fin, Fout)        fusion fc weight (transposed)
    b_fc_ref : (1, Fout)          fusion fc bias
    out_ref  : (1, N, Fout)       fusion_out
    prob_ref : (1, H, N, N)       per-head attention probabilities
    """
    x = x_ref[0]                  # (N, Fin)
    adj = adj_ref[0]              # (N, N)

    # Load shared params once (no per-head re-broadcast).
    A = a_ref[...]                # (Fin, 2H)
    w_gat = w_gat_ref[...]        # (H*Din, H*Dout)
    b_gat = b_gat_ref[...]        # (1, H*Dout)
    w_fc = w_fc_ref[...]          # (Fin, Fout)
    b_fc = b_fc_ref[...]          # (1, Fout)

    H = prob_ref.shape[1]
    Fin = x.shape[1]
    Din = Fin // H

    # One matmul for every head's xi / xj scores: (N, 2H).
    scores = jnp.dot(x, A, preferred_element_type=jnp.float32)
    xi_all = scores[:, :H]            # (N, H)  -- xi for head h in column h
    xj_all_t = scores[:, H:].T        # (H, N)  -- single small transpose

    relu_parts = []
    for h in range(H):
        # s[i, j] = xi_h[i] + xj_h[j]
        s = xi_all[:, h:h + 1] + xj_all_t[h:h + 1, :]         # (N, N)
        # leaky_relu (default negative_slope = 0.01)
        s = jnp.where(s > 0, s, 0.01 * s)
        # softmax over last axis (adj is None inside the GAT layer -> no mask)
        s = s - jnp.max(s, axis=-1, keepdims=True)
        e = jnp.exp(s)
        inv = pl.reciprocal(jnp.sum(e, axis=-1, keepdims=True), approx=True)
        p = e * inv                                           # (N, N)
        prob_ref[0, h] = p

        x_h = x[:, h * Din:(h + 1) * Din]                     # (N, Din)
        att_x = jnp.dot(p, x_h, preferred_element_type=jnp.float32)
        relu_parts.append(jnp.maximum(att_x, 0.0))            # ReLU (GAT fc)

    # Packed per-head Linear: (N, H*Din) @ block-diag -> (N, H*Dout).
    att_packed = jnp.concatenate(relu_parts, axis=-1)
    att_out = jnp.dot(att_packed, w_gat,
                      preferred_element_type=jnp.float32) + b_gat

    # Fusion branch: fc(ReLU(adj @ x)) + att_out.
    msg = jnp.dot(adj, x, preferred_element_type=jnp.float32)  # (N, Fin)
    fused = jnp.dot(jnp.maximum(msg, 0.0), w_fc,
                    preferred_element_type=jnp.float32) + b_fc
    out_ref[0] = fused + att_out


# ------------------------------ Wrapper ------------------------------------ #

def fusion_graph_attention_forward(x, adj, params, n_heads):
    """Full FusionGraphAttentionLayer.forward.

    x   : (B, N, in_features)   float32
    adj : (B, N, N)             float32
    returns (fusion_out (B, N, out_features), att_prob (B*H, N, N))
    """
    B, N, Fin = x.shape
    H = n_heads
    assert Fin % H == 0
    Din = Fin // H
    W_gat = params["gat_fc_w"]                     # (Dout, Din)
    Dout = W_gat.shape[0]
    Fout = params["fc_w"].shape[0]
    assert H * Dout == Fout, "out_features must equal n_heads * head_out_dim"

    f32 = jnp.float32
    eye_h = jnp.eye(H, dtype=f32)

    # Block-structured attention vectors: column h of A_i (A_j) holds the
    # a_i (a_j) vector in rows [h*Din, (h+1)*Din).
    a_vec = params["att_w"][0].astype(f32)         # (2*Din,)
    a_i, a_j = a_vec[:Din], a_vec[Din:]
    Ai = jnp.einsum("hk,d->hdk", eye_h, a_i).reshape(H * Din, H)
    Aj = jnp.einsum("hk,d->hdk", eye_h, a_j).reshape(H * Din, H)
    A = jnp.concatenate([Ai, Aj], axis=1)          # (Fin, 2H)

    # Block-diagonal per-head GAT fc weight + tiled bias.
    w_gat_blk = jnp.einsum("hk,de->hdke", eye_h,
                           W_gat.T.astype(f32)).reshape(H * Din, H * Dout)
    b_gat_t = jnp.tile(params["gat_fc_b"].astype(f32), H).reshape(1, H * Dout)

    w_fc_t = params["fc_w"].T.astype(f32)          # (Fin, Fout)
    b_fc2 = params["fc_b"].astype(f32).reshape(1, Fout)

    # Advisory cost estimate.
    flops = B * (2 * N * Fin * 2 * H            # xi/xj scores
                 + H * 2 * N * N * Din          # p @ x_h
                 + 2 * N * (H * Din) * (H * Dout)  # packed GAT linear
                 + 2 * N * N * Fin              # adj @ x
                 + 2 * N * Fin * Fout)          # fusion linear
    transcendentals = B * H * N * (N + 1)       # exp + reciprocal
    bytes_accessed = 4 * (B * N * Fin + B * N * N + B * H * N * N
                          + B * N * Fout
                          + Fin * 2 * H + H * Din * H * Dout + H * Dout
                          + Fin * Fout + Fout)

    fused_out, prob = pl.pallas_call(
        fused_gat_kernel,
        out_shape=(
            jax.ShapeDtypeStruct((B, N, Fout), f32),
            jax.ShapeDtypeStruct((B, H, N, N), f32),
        ),
        grid_spec=pltpu.PrefetchScalarGridSpec(
            num_scalar_prefetch=0,
            grid=(B,),
            in_specs=[
                pl.BlockSpec((1, N, Fin), lambda b: (b, 0, 0)),
                pl.BlockSpec((1, N, N), lambda b: (b, 0, 0)),
                pl.BlockSpec((Fin, 2 * H), lambda b: (0, 0)),
                pl.BlockSpec((H * Din, H * Dout), lambda b: (0, 0)),
                pl.BlockSpec((1, H * Dout), lambda b: (0, 0)),
                pl.BlockSpec((Fin, Fout), lambda b: (0, 0)),
                pl.BlockSpec((1, Fout), lambda b: (0, 0)),
            ],
            out_specs=[
                pl.BlockSpec((1, N, Fout), lambda b: (b, 0, 0)),
                pl.BlockSpec((1, H, N, N), lambda b: (b, 0, 0, 0)),
            ],
        ),
        compiler_params=pltpu.CompilerParams(
            dimension_semantics=("parallel",)),
        cost_estimate=pl.CostEstimate(
            flops=flops,
            transcendentals=transcendentals,
            bytes_accessed=bytes_accessed),
    )(x, adj, A, w_gat_blk, b_gat_t, w_fc_t, b_fc2)

    # (B, H, N, N) -> (B*H, N, N): contiguous reshape matching transpose_x's
    # batch-major / head-minor ordering.
    att_prob = prob.reshape(B * H, N, N)
    return fused_out, att_prob


# ------------------------- Pure-JAX reference ------------------------------ #

def reference_forward(x, adj, params, n_heads):
    B, N, Fin = x.shape
    H = n_heads
    Din = Fin // H
    xh = x.reshape(B, N, H, Din).transpose(0, 2, 1, 3).reshape(B * H, N, Din)
    att_w_t = params["att_w"].T
    xi = xh @ att_w_t[:Din]                            # (BH, N, 1)
    xj = (xh @ att_w_t[Din:]).squeeze(-1)[:, None, :]  # (BH, 1, N)
    s = xi + xj
    s = jnp.where(s > 0, s, 0.01 * s)
    p = jax.nn.softmax(s, axis=2)
    att_x = jnp.einsum("bij,bjd->bid", p, xh)
    h = jnp.maximum(att_x, 0.0)
    head_out = h @ params["gat_fc_w"].T + params["gat_fc_b"]
    Dout = head_out.shape[-1]
    att_out = head_out.reshape(B, H, N, Dout).transpose(0, 2, 1, 3).reshape(
        B, N, H * Dout)
    msg = jnp.einsum("bij,bjf->bif", adj, x)
    fused = jnp.maximum(msg, 0.0) @ params["fc_w"].T + params["fc_b"] + att_out
    return fused, p


# --------------------------------- Main ------------------------------------ #

if __name__ == "__main__":
    B, N = 2, 16
    in_features, out_features, n_heads = 32, 32, 4
    Din = in_features // n_heads
    Dout = out_features // n_heads

    key = jax.random.PRNGKey(0)
    k = jax.random.split(key, 8)

    x = jax.random.normal(k[0], (B, N, in_features), dtype=jnp.float32)
    adj = (jax.random.uniform(k[1], (B, N, N)) > 0.5).astype(jnp.float32)

    # Deterministic parameter init (shapes follow the nn.Linear layers).
    params = {
        # GraphAttentionLayer.fc = Sequential(ReLU, Linear(in_dim, out_dim))
        "gat_fc_w": jax.random.normal(k[2], (Dout, Din), dtype=jnp.float32) * 0.1,
        "gat_fc_b": jax.random.normal(k[3], (Dout,), dtype=jnp.float32) * 0.1,
        # GraphAttentionLayer.att_layer = Linear(2*in_dim, 1)
        # (its bias is never used in forward, matching the PyTorch code)
        "att_w": jax.random.normal(k[4], (1, 2 * Din), dtype=jnp.float32) * 0.1,
        # FusionGraphAttentionLayer.fc = Sequential(ReLU, Linear(in_f, out_f))
        "fc_w": jax.random.normal(k[5], (out_features, in_features),
                                  dtype=jnp.float32) * 0.1,
        "fc_b": jax.random.normal(k[6], (out_features,), dtype=jnp.float32) * 0.1,
    }

    fusion_out, att_prob = fusion_graph_attention_forward(x, adj, params, n_heads)
    jax.block_until_ready((fusion_out, att_prob))

    ref_out, ref_prob = reference_forward(x, adj, params, n_heads)
    assert fusion_out.shape == (B, N, out_features)
    assert att_prob.shape == (B * n_heads, N, N)
    # Slightly looser tolerance: softmax denominator uses the EUP approximate
    # reciprocal (pl.reciprocal(approx=True)).
    np.testing.assert_allclose(np.asarray(fusion_out), np.asarray(ref_out),
                               rtol=2e-3, atol=2e-3)
    np.testing.assert_allclose(np.asarray(att_prob), np.asarray(ref_prob),
                               rtol=2e-3, atol=2e-3)

    print("KERNEL_OK")
</pallas_src>

<mosaic_0001>
module attributes {stable_mosaic.version = 11 : i64} {
  func.func @fused_gat_kernel(%arg0: i32, %arg1: memref<1x16x32xf32, #tpu.memory_space<vmem>>, %arg2: memref<1x16x16xf32, #tpu.memory_space<vmem>>, %arg3: memref<32x8xf32, #tpu.memory_space<vmem>>, %arg4: memref<32x32xf32, #tpu.memory_space<vmem>>, %arg5: memref<1x32xf32, #tpu.memory_space<vmem>>, %arg6: memref<32x32xf32, #tpu.memory_space<vmem>>, %arg7: memref<1x32xf32, #tpu.memory_space<vmem>>, %arg8: memref<1x16x32xf32, #tpu.memory_space<vmem>>, %arg9: memref<1x4x16x16xf32, #tpu.memory_space<vmem>>) attributes {dimension_semantics = [#tpu.dimension_semantics<parallel>], iteration_bounds = array<i64: 2>, scalar_prefetch = 0 : i64, scratch_operands = 0 : i64, tpu.core_type = #tpu.core_type<tc>, window_params = [{transform_indices = @transform_0, window_bounds = array<i64: 1, 16, 32>}, {transform_indices = @transform_1, window_bounds = array<i64: 1, 16, 16>}, {pipeline_mode = #tpu.pipeline_mode<synchronous>, transform_indices = @transform_2, window_bounds = array<i64: 32, 8>}, {pipeline_mode = #tpu.pipeline_mode<synchronous>, transform_indices = @transform_3, window_bounds = array<i64: 32, 32>}, {pipeline_mode = #tpu.pipeline_mode<synchronous>, transform_indices = @transform_4, window_bounds = array<i64: 1, 32>}, {pipeline_mode = #tpu.pipeline_mode<synchronous>, transform_indices = @transform_5, window_bounds = array<i64: 32, 32>}, {pipeline_mode = #tpu.pipeline_mode<synchronous>, transform_indices = @transform_6, window_bounds = array<i64: 1, 32>}, {transform_indices = @transform_7, window_bounds = array<i64: 1, 16, 32>}, {transform_indices = @transform_8, window_bounds = array<i64: 1, 4, 16, 16>}]} {
    %c0 = arith.constant 0 : index
    %c0_0 = arith.constant 0 : index
    %c0_1 = arith.constant 0 : index
    %0 = vector.load %arg1[%c0, %c0_0, %c0_1] : memref<1x16x32xf32, #tpu.memory_space<vmem>>, vector<1x16x32xf32>
    %1 = vector.shape_cast %0 : vector<1x16x32xf32> to vector<16x32xf32>
    %c0_2 = arith.constant 0 : index
    %c0_3 = arith.constant 0 : index
    %c0_4 = arith.constant 0 : index
    %2 = vector.load %arg2[%c0_2, %c0_3, %c0_4] : memref<1x16x16xf32, #tpu.memory_space<vmem>>, vector<1x16x16xf32>
    %3 = vector.shape_cast %2 : vector<1x16x16xf32> to vector<16x16xf32>
    %c0_5 = arith.constant 0 : index
    %c0_6 = arith.constant 0 : index
    %4 = vector.load %arg3[%c0_5, %c0_6] : memref<32x8xf32, #tpu.memory_space<vmem>>, vector<32x8xf32>
    %c0_7 = arith.constant 0 : index
    %c0_8 = arith.constant 0 : index
    %5 = vector.load %arg4[%c0_7, %c0_8] : memref<32x32xf32, #tpu.memory_space<vmem>>, vector<32x32xf32>
    %c0_9 = arith.constant 0 : index
    %c0_10 = arith.constant 0 : index
    %6 = vector.load %arg5[%c0_9, %c0_10] : memref<1x32xf32, #tpu.memory_space<vmem>>, vector<1x32xf32>
    %c0_11 = arith.constant 0 : index
    %c0_12 = arith.constant 0 : index
    %7 = vector.load %arg6[%c0_11, %c0_12] : memref<32x32xf32, #tpu.memory_space<vmem>>, vector<32x32xf32>
    %c0_13 = arith.constant 0 : index
    %c0_14 = arith.constant 0 : index
    %8 = vector.load %arg7[%c0_13, %c0_14] : memref<1x32xf32, #tpu.memory_space<vmem>>, vector<1x32xf32>
    %cst = arith.constant dense<0.000000e+00> : vector<16x8xf32>
    %9 = tpu.matmul %1, %4, %cst {dimension_numbers = #tpu.dot_dimension_numbers<[1], [0], [0], [1], [0, 0, 1, 1], [], []>} : vector<16x32xf32>, vector<32x8xf32>, vector<16x8xf32> -> vector<16x8xf32>
    %10 = vector.extract_strided_slice %9 {offsets = [0, 0], sizes = [16, 4], strides = [1, 1]} : vector<16x8xf32> to vector<16x4xf32>
    %11 = vector.extract_strided_slice %9 {offsets = [0, 4], sizes = [16, 4], strides = [1, 1]} : vector<16x8xf32> to vector<16x4xf32>
    %12 = tpu.transpose %11, [1, 0] : vector<16x4xf32> -> vector<4x16xf32>
    %13 = vector.extract_strided_slice %10 {offsets = [0, 0], sizes = [16, 1], strides = [1, 1]} : vector<16x4xf32> to vector<16x1xf32>
    %14 = vector.extract_strided_slice %12 {offsets = [0, 0], sizes = [1, 16], strides = [1, 1]} : vector<4x16xf32> to vector<1x16xf32>
    %15 = vector.broadcast %13 : vector<16x1xf32> to vector<16x16xf32>
    %16 = vector.broadcast %14 : vector<1x16xf32> to vector<16x16xf32>
    %17 = arith.addf %15, %16 : vector<16x16xf32>
    %cst_15 = arith.constant 0.000000e+00 : f32
    %18 = vector.broadcast %cst_15 : f32 to vector<16x16xf32>
    %19 = arith.cmpf ogt, %17, %18 : vector<16x16xf32>
    %cst_16 = arith.constant 0.00999999977 : f32
    %20 = vector.broadcast %cst_16 : f32 to vector<16x16xf32>
    %21 = arith.mulf %20, %17 : vector<16x16xf32>
    %22 = arith.select %19, %17, %21 : vector<16x16xi1>, vector<16x16xf32>
    %cst_17 = arith.constant dense<0xFF800000> : vector<16xf32>
    %23 = vector.multi_reduction <maximumf>, %22, %cst_17 [1] : vector<16x16xf32> to vector<16xf32>
    %24 = vector.shape_cast %23 : vector<16xf32> to vector<16x1xf32>
    %25 = vector.broadcast %24 : vector<16x1xf32> to vector<16x16xf32>
    %26 = arith.subf %22, %25 : vector<16x16xf32>
    %27 = math.exp %26 : vector<16x16xf32>
    %cst_18 = arith.constant dense<0.000000e+00> : vector<16xf32>
    %28 = vector.multi_reduction <add>, %27, %cst_18 [1] : vector<16x16xf32> to vector<16xf32>
    %29 = vector.shape_cast %28 : vector<16xf32> to vector<16x1xf32>
    %30 = tpu.reciprocal %29 {approx = true} : vector<16x1xf32> -> vector<16x1xf32>
    %31 = vector.broadcast %30 : vector<16x1xf32> to vector<16x16xf32>
    %32 = arith.mulf %27, %31 : vector<16x16xf32>
    %c0_19 = arith.constant 0 : index
    %c0_20 = arith.constant 0 : index
    %c0_21 = arith.constant 0 : index
    %c0_22 = arith.constant 0 : index
    %33 = vector.load %arg9[%c0_19, %c0_20, %c0_21, %c0_22] : memref<1x4x16x16xf32, #tpu.memory_space<vmem>>, vector<1x1x16x16xf32>
    %34 = vector.shape_cast %33 : vector<1x1x16x16xf32> to vector<16x16xf32>
    %35 = vector.shape_cast %32 : vector<16x16xf32> to vector<1x1x16x16xf32>
    tpu.vector_store %arg9[%c0_19, %c0_20, %c0_21, %c0_22], %35 {strides = array<i32>} : memref<1x4x16x16xf32, #tpu.memory_space<vmem>>, vector<1x1x16x16xf32>,
    %36 = vector.extract_strided_slice %1 {offsets = [0, 0], sizes = [16, 8], strides = [1, 1]} : vector<16x32xf32> to vector<16x8xf32>
    %cst_23 = arith.constant dense<0.000000e+00> : vector<16x8xf32>
    %37 = tpu.matmul %32, %36, %cst_23 {dimension_numbers = #tpu.dot_dimension_numbers<[1], [0], [0], [1], [0, 0, 1, 1], [], []>} : vector<16x16xf32>, vector<16x8xf32>, vector<16x8xf32> -> vector<16x8xf32>
    %cst_24 = arith.constant 0.000000e+00 : f32
    %38 = vector.broadcast %cst_24 : f32 to vector<16x8xf32>
    %39 = arith.maximumf %37, %38 : vector<16x8xf32>
    %40 = vector.extract_strided_slice %10 {offsets = [0, 1], sizes = [16, 1], strides = [1, 1]} : vector<16x4xf32> to vector<16x1xf32>
    %41 = vector.extract_strided_slice %12 {offsets = [1, 0], sizes = [1, 16], strides = [1, 1]} : vector<4x16xf32> to vector<1x16xf32>
    %42 = vector.broadcast %40 : vector<16x1xf32> to vector<16x16xf32>
    %43 = vector.broadcast %41 : vector<1x16xf32> to vector<16x16xf32>
    %44 = arith.addf %42, %43 : vector<16x16xf32>
    %cst_25 = arith.constant 0.000000e+00 : f32
    %45 = vector.broadcast %cst_25 : f32 to vector<16x16xf32>
    %46 = arith.cmpf ogt, %44, %45 : vector<16x16xf32>
    %cst_26 = arith.constant 0.00999999977 : f32
    %47 = vector.broadcast %cst_26 : f32 to vector<16x16xf32>
    %48 = arith.mulf %47, %44 : vector<16x16xf32>
    %49 = arith.select %46, %44, %48 : vector<16x16xi1>, vector<16x16xf32>
    %cst_27 = arith.constant dense<0xFF800000> : vector<16xf32>
    %50 = vector.multi_reduction <maximumf>, %49, %cst_27 [1] : vector<16x16xf32> to vector<16xf32>
    %51 = vector.shape_cast %50 : vector<16xf32> to vector<16x1xf32>
    %52 = vector.broadcast %51 : vector<16x1xf32> to vector<16x16xf32>
    %53 = arith.subf %49, %52 : vector<16x16xf32>
    %54 = math.exp %53 : vector<16x16xf32>
    %cst_28 = arith.constant dense<0.000000e+00> : vector<16xf32>
    %55 = vector.multi_reduction <add>, %54, %cst_28 [1] : vector<16x16xf32> to vector<16xf32>
    %56 = vector.shape_cast %55 : vector<16xf32> to vector<16x1xf32>
    %57 = tpu.reciprocal %56 {approx = true} : vector<16x1xf32> -> vector<16x1xf32>
    %58 = vector.broadcast %57 : vector<16x1xf32> to vector<16x16xf32>
    %59 = arith.mulf %54, %58 : vector<16x16xf32>
    %c0_29 = arith.constant 0 : index
    %c1 = arith.constant 1 : index
    %c0_30 = arith.constant 0 : index
    %c0_31 = arith.constant 0 : index
    %60 = vector.load %arg9[%c0_29, %c1, %c0_30, %c0_31] : memref<1x4x16x16xf32, #tpu.memory_space<vmem>>, vector<1x1x16x16xf32>
    %61 = vector.shape_cast %60 : vector<1x1x16x16xf32> to vector<16x16xf32>
    %62 = vector.shape_cast %59 : vector<16x16xf32> to vector<1x1x16x16xf32>
    tpu.vector_store %arg9[%c0_29, %c1, %c0_30, %c0_31], %62 {strides = array<i32>} : memref<1x4x16x16xf32, #tpu.memory_space<vmem>>, vector<1x1x16x16xf32>,
    %63 = vector.extract_strided_slice %1 {offsets = [0, 8], sizes = [16, 8], strides = [1, 1]} : vector<16x32xf32> to vector<16x8xf32>
    %cst_32 = arith.constant dense<0.000000e+00> : vector<16x8xf32>
    %64 = tpu.matmul %59, %63, %cst_32 {dimension_numbers = #tpu.dot_dimension_numbers<[1], [0], [0], [1], [0, 0, 1, 1], [], []>} : vector<16x16xf32>, vector<16x8xf32>, vector<16x8xf32> -> vector<16x8xf32>
    %cst_33 = arith.constant 0.000000e+00 : f32
    %65 = vector.broadcast %cst_33 : f32 to vector<16x8xf32>
    %66 = arith.maximumf %64, %65 : vector<16x8xf32>
    %67 = vector.extract_strided_slice %10 {offsets = [0, 2], sizes = [16, 1], strides = [1, 1]} : vector<16x4xf32> to vector<16x1xf32>
    %68 = vector.extract_strided_slice %12 {offsets = [2, 0], sizes = [1, 16], strides = [1, 1]} : vector<4x16xf32> to vector<1x16xf32>
    %69 = vector.broadcast %67 : vector<16x1xf32> to vector<16x16xf32>
    %70 = vector.broadcast %68 : vector<1x16xf32> to vector<16x16xf32>
    %71 = arith.addf %69, %70 : vector<16x16xf32>
    %cst_34 = arith.constant 0.000000e+00 : f32
    %72 = vector.broadcast %cst_34 : f32 to vector<16x16xf32>
    %73 = arith.cmpf ogt, %71, %72 : vector<16x16xf32>
    %cst_35 = arith.constant 0.00999999977 : f32
    %74 = vector.broadcast %cst_35 : f32 to vector<16x16xf32>
    %75 = arith.mulf %74, %71 : vector<16x16xf32>
    %76 = arith.select %73, %71, %75 : vector<16x16xi1>, vector<16x16xf32>
    %cst_36 = arith.constant dense<0xFF800000> : vector<16xf32>
    %77 = vector.multi_reduction <maximumf>, %76, %cst_36 [1] : vector<16x16xf32> to vector<16xf32>
    %78 = vector.shape_cast %77 : vector<16xf32> to vector<16x1xf32>
    %79 = vector.broadcast %78 : vector<16x1xf32> to vector<16x16xf32>
    %80 = arith.subf %76, %79 : vector<16x16xf32>
    %81 = math.exp %80 : vector<16x16xf32>
    %cst_37 = arith.constant dense<0.000000e+00> : vector<16xf32>
    %82 = vector.multi_reduction <add>, %81, %cst_37 [1] : vector<16x16xf32> to vector<16xf32>
    %83 = vector.shape_cast %82 : vector<16xf32> to vector<16x1xf32>
    %84 = tpu.reciprocal %83 {approx = true} : vector<16x1xf32> -> vector<16x1xf32>
    %85 = vector.broadcast %84 : vector<16x1xf32> to vector<16x16xf32>
    %86 = arith.mulf %81, %85 : vector<16x16xf32>
    %c0_38 = arith.constant 0 : index
    %c2 = arith.constant 2 : index
    %c0_39 = arith.constant 0 : index
    %c0_40 = arith.constant 0 : index
    %87 = vector.load %arg9[%c0_38, %c2, %c0_39, %c0_40] : memref<1x4x16x16xf32, #tpu.memory_space<vmem>>, vector<1x1x16x16xf32>
    %88 = vector.shape_cast %87 : vector<1x1x16x16xf32> to vector<16x16xf32>
    %89 = vector.shape_cast %86 : vector<16x16xf32> to vector<1x1x16x16xf32>
    tpu.vector_store %arg9[%c0_38, %c2, %c0_39, %c0_40], %89 {strides = array<i32>} : memref<1x4x16x16xf32, #tpu.memory_space<vmem>>, vector<1x1x16x16xf32>,
    %90 = vector.extract_strided_slice %1 {offsets = [0, 16], sizes = [16, 8], strides = [1, 1]} : vector<16x32xf32> to vector<16x8xf32>
    %cst_41 = arith.constant dense<0.000000e+00> : vector<16x8xf32>
    %91 = tpu.matmul %86, %90, %cst_41 {dimension_numbers = #tpu.dot_dimension_numbers<[1], [0], [0], [1], [0, 0, 1, 1], [], []>} : vector<16x16xf32>, vector<16x8xf32>, vector<16x8xf32> -> vector<16x8xf32>
    %cst_42 = arith.constant 0.000000e+00 : f32
    %92 = vector.broadcast %cst_42 : f32 to vector<16x8xf32>
    %93 = arith.maximumf %91, %92 : vector<16x8xf32>
    %94 = vector.extract_strided_slice %10 {offsets = [0, 3], sizes = [16, 1], strides = [1, 1]} : vector<16x4xf32> to vector<16x1xf32>
    %95 = vector.extract_strided_slice %12 {offsets = [3, 0], sizes = [1, 16], strides = [1, 1]} : vector<4x16xf32> to vector<1x16xf32>
    %96 = vector.broadcast %94 : vector<16x1xf32> to vector<16x16xf32>
    %97 = vector.broadcast %95 : vector<1x16xf32> to vector<16x16xf32>
    %98 = arith.addf %96, %97 : vector<16x16xf32>
    %cst_43 = arith.constant 0.000000e+00 : f32
    %99 = vector.broadcast %cst_43 : f32 to vector<16x16xf32>
    %100 = arith.cmpf ogt, %98, %99 : vector<16x16xf32>
    %cst_44 = arith.constant 0.00999999977 : f32
    %101 = vector.broadcast %cst_44 : f32 to vector<16x16xf32>
    %102 = arith.mulf %101, %98 : vector<16x16xf32>
    %103 = arith.select %100, %98, %102 : vector<16x16xi1>, vector<16x16xf32>
    %cst_45 = arith.constant dense<0xFF800000> : vector<16xf32>
    %104 = vector.multi_reduction <maximumf>, %103, %cst_45 [1] : vector<16x16xf32> to vector<16xf32>
    %105 = vector.shape_cast %104 : vector<16xf32> to vector<16x1xf32>
    %106 = vector.broadcast %105 : vector<16x1xf32> to vector<16x16xf32>
    %107 = arith.subf %103, %106 : vector<16x16xf32>
    %108 = math.exp %107 : vector<16x16xf32>
    %cst_46 = arith.constant dense<0.000000e+00> : vector<16xf32>
    %109 = vector.multi_reduction <add>, %108, %cst_46 [1] : vector<16x16xf32> to vector<16xf32>
    %110 = vector.shape_cast %109 : vector<16xf32> to vector<16x1xf32>
    %111 = tpu.reciprocal %110 {approx = true} : vector<16x1xf32> -> vector<16x1xf32>
    %112 = vector.broadcast %111 : vector<16x1xf32> to vector<16x16xf32>
    %113 = arith.mulf %108, %112 : vector<16x16xf32>
    %c0_47 = arith.constant 0 : index
    %c3 = arith.constant 3 : index
    %c0_48 = arith.constant 0 : index
    %c0_49 = arith.constant 0 : index
    %114 = vector.load %arg9[%c0_47, %c3, %c0_48, %c0_49] : memref<1x4x16x16xf32, #tpu.memory_space<vmem>>, vector<1x1x16x16xf32>
    %115 = vector.shape_cast %114 : vector<1x1x16x16xf32> to vector<16x16xf32>
    %116 = vector.shape_cast %113 : vector<16x16xf32> to vector<1x1x16x16xf32>
    tpu.vector_store %arg9[%c0_47, %c3, %c0_48, %c0_49], %116 {strides = array<i32>} : memref<1x4x16x16xf32, #tpu.memory_space<vmem>>, vector<1x1x16x16xf32>,
    %117 = vector.extract_strided_slice %1 {offsets = [0, 24], sizes = [16, 8], strides = [1, 1]} : vector<16x32xf32> to vector<16x8xf32>
    %cst_50 = arith.constant dense<0.000000e+00> : vector<16x8xf32>
    %118 = tpu.matmul %113, %117, %cst_50 {dimension_numbers = #tpu.dot_dimension_numbers<[1], [0], [0], [1], [0, 0, 1, 1], [], []>} : vector<16x16xf32>, vector<16x8xf32>, vector<16x8xf32> -> vector<16x8xf32>
    %cst_51 = arith.constant 0.000000e+00 : f32
    %119 = vector.broadcast %cst_51 : f32 to vector<16x8xf32>
    %120 = arith.maximumf %118, %119 : vector<16x8xf32>
    %121 = tpu.concatenate %39, %66, %93, %120 in 1 : vector<16x8xf32>, vector<16x8xf32>, vector<16x8xf32>, vector<16x8xf32> -> vector<16x32xf32>
    %cst_52 = arith.constant dense<0.000000e+00> : vector<16x32xf32>
    %122 = tpu.matmul %121, %5, %cst_52 {dimension_numbers = #tpu.dot_dimension_numbers<[1], [0], [0], [1], [0, 0, 1, 1], [], []>} : vector<16x32xf32>, vector<32x32xf32>, vector<16x32xf32> -> vector<16x32xf32>
    %123 = vector.broadcast %6 : vector<1x32xf32> to vector<16x32xf32>
    %124 = arith.addf %122, %123 : vector<16x32xf32>
    %cst_53 = arith.constant dense<0.000000e+00> : vector<16x32xf32>
    %125 = tpu.matmul %3, %1, %cst_53 {dimension_numbers = #tpu.dot_dimension_numbers<[1], [0], [0], [1], [0, 0, 1, 1], [], []>} : vector<16x16xf32>, vector<16x32xf32>, vector<16x32xf32> -> vector<16x32xf32>
    %cst_54 = arith.constant 0.000000e+00 : f32
    %126 = vector.broadcast %cst_54 : f32 to vector<16x32xf32>
    %127 = arith.maximumf %125, %126 : vector<16x32xf32>
    %cst_55 = arith.constant dense<0.000000e+00> : vector<16x32xf32>
    %128 = tpu.matmul %127, %7, %cst_55 {dimension_numbers = #tpu.dot_dimension_numbers<[1], [0], [0], [1], [0, 0, 1, 1], [], []>} : vector<16x32xf32>, vector<32x32xf32>, vector<16x32xf32> -> vector<16x32xf32>
    %129 = vector.broadcast %8 : vector<1x32xf32> to vector<16x32xf32>
    %130 = arith.addf %128, %129 : vector<16x32xf32>
    %131 = arith.addf %130, %124 : vector<16x32xf32>
    %c0_56 = arith.constant 0 : index
    %c0_57 = arith.constant 0 : index
    %c0_58 = arith.constant 0 : index
    %132 = vector.load %arg8[%c0_56, %c0_57, %c0_58] : memref<1x16x32xf32, #tpu.memory_space<vmem>>, vector<1x16x32xf32>
    %133 = vector.shape_cast %132 : vector<1x16x32xf32> to vector<16x32xf32>
    %134 = vector.shape_cast %131 : vector<16x32xf32> to vector<1x16x32xf32>
    tpu.vector_store %arg8[%c0_56, %c0_57, %c0_58], %134 {strides = array<i32>} : memref<1x16x32xf32, #tpu.memory_space<vmem>>, vector<1x16x32xf32>,
    return
  }
  func.func @transform_0(%arg0: i32) -> (i32, i32, i32) {
    %c0_i32 = arith.constant 0 : i32
    %c0_i32_0 = arith.constant 0 : i32
    %c0_i32_1 = arith.constant 0 : i32
    return %arg0, %c0_i32, %c0_i32_0 : i32, i32, i32
  }
  func.func @transform_1(%arg0: i32) -> (i32, i32, i32) {
    %c0_i32 = arith.constant 0 : i32
    %c0_i32_0 = arith.constant 0 : i32
    %c0_i32_1 = arith.constant 0 : i32
    return %arg0, %c0_i32, %c0_i32_0 : i32, i32, i32
  }
  func.func @transform_2(%arg0: i32) -> (i32, i32) {
    %c0_i32 = arith.constant 0 : i32
    %c0_i32_0 = arith.constant 0 : i32
    %c0_i32_1 = arith.constant 0 : i32
    return %c0_i32, %c0_i32_0 : i32, i32
  }
  func.func @transform_3(%arg0: i32) -> (i32, i32) {
    %c0_i32 = arith.constant 0 : i32
    %c0_i32_0 = arith.constant 0 : i32
    %c0_i32_1 = arith.constant 0 : i32
    return %c0_i32, %c0_i32_0 : i32, i32
  }
  func.func @transform_4(%arg0: i32) -> (i32, i32) {
    %c0_i32 = arith.constant 0 : i32
    %c0_i32_0 = arith.constant 0 : i32
    %c0_i32_1 = arith.constant 0 : i32
    return %c0_i32, %c0_i32_0 : i32, i32
  }
  func.func @transform_5(%arg0: i32) -> (i32, i32) {
    %c0_i32 = arith.constant 0 : i32
    %c0_i32_0 = arith.constant 0 : i32
    %c0_i32_1 = arith.constant 0 : i32
    return %c0_i32, %c0_i32_0 : i32, i32
  }
  func.func @transform_6(%arg0: i32) -> (i32, i32) {
    %c0_i32 = arith.constant 0 : i32
    %c0_i32_0 = arith.constant 0 : i32
    %c0_i32_1 = arith.constant 0 : i32
    return %c0_i32, %c0_i32_0 : i32, i32
  }
  func.func @transform_7(%arg0: i32) -> (i32, i32, i32) {
    %c0_i32 = arith.constant 0 : i32
    %c0_i32_0 = arith.constant 0 : i32
    %c0_i32_1 = arith.constant 0 : i32
    return %arg0, %c0_i32, %c0_i32_0 : i32, i32, i32
  }
  func.func @transform_8(%arg0: i32) -> (i32, i32, i32, i32) {
    %c0_i32 = arith.constant 0 : i32
    %c0_i32_0 = arith.constant 0 : i32
    %c0_i32_1 = arith.constant 0 : i32
    %c0_i32_2 = arith.constant 0 : i32
    return %arg0, %c0_i32, %c0_i32_0, %c0_i32_1 : i32, i32, i32, i32
  }
}

</mosaic_0001>

<bundles_post_ra>
// kernel: tpu_custom_call.1
= control target key start
LH: loop header
LB: loop body
LE: loop exit
PB: predicated region body
PF: predicated region fallthrough
CT: control target
= control target key end

     0   :  { %s2525_s0 = inlined_call_operand.vmem [shape: f32[2,16,32], index: 0, kind: input, shape index: {}]   ;;  %s2526_s1 = inlined_call_operand.hbm [shape: f32[2,16,16], index: 1, kind: input, shape index: {}]   ;;  %s2527_s2 = inlined_call_operand.vmem [shape: f32[32,8], index: 2, kind: input, shape index: {}]   ;;  %s2528_s3 = inlined_call_operand.hbm [shape: f32[32,32], index: 3, kind: input, shape index: {}]   ;;  %s2529_s4 = inlined_call_operand.vmem [shape: f32[1,32], index: 4, kind: input, shape index: {}]   ;;  %s2530_s5 = inlined_call_operand.hbm [shape: f32[32,32], index: 5, kind: input, shape index: {}]   ;;  %s2531_s6 = inlined_call_operand.vmem [shape: f32[1,32], index: 6, kind: input, shape index: {}]   ;;  %s2532_s7 = inlined_call_operand.hbm [shape: f32[2,16,32], index: 7, kind: output, shape index: {0}]   ;;  %s2533_s8 = inlined_call_operand.hbm [shape: f32[2,4,16,16], index: 8, kind: output, shape index: {1}]  }
   0x1   :  { %2540 = sst [smem:[#allocation15_spill]] %s2526_s1 }
   0x2   :  { %14 = vsyncpa [#allocation3], 0 }
   0x3   :  { %16 = vsyncpa [#allocation3 + $0x1], 0 }
   0x4   :  { %17 = vsyncpa [#allocation6], 0 }
   0x5   :  { %18 = vsyncpa [#allocation4], 0 }
   0x6   :  { %20 = vsyncpa [#allocation4 + $0x1], 0 }
   0x7   :  { %21 = vsyncpa [#allocation10], 0 }
   0x8   :  { %23 = vsyncpa [#allocation10 + $0x1], 0  ;;  %s2122_s27 = smov 0   ;;  %s2124_s28 = smov 0  }
   0x9   :  { %s2126_s29 = smov 0   ;;  %s2128_s30 = smov 0  }
   0xa LB: > { %s2143_s9 = sadd.s32 4294967295, %s2056_s30   ;;  %s1518_s10 = sadd.s32 4294967294, %s2056_s30   ;;  %s2056_s30 = sphi %s2128_s30, %s2561_s30   ;;  %s2052_s29 = sphi %s2126_s29, %s2560_s29   ;;  %s2048_s28 = sphi %s2124_s28, %s2559_s28   ;;  %s2044_s27 = sphi %s2122_s27, %s2558_s27  }
   0xb   : > { %p75_p0 = scmp.ne.s32.totalorder %s2048_s28, %s2044_s27  ;;  %p2534_p1 = scmp.eq.s32.totalorder %s2143_s9, 0 }
   0xc   : > { %p210_p3 = scmp.eq.s32.totalorder %s1518_s10, 1  ;;  %p1519_p5 = scmp.ge.s32.totalorder %s2056_s30, 1 }
   0xd   : > { %p2152_p4 = por %p2534_p1, %p75_p0  ;;  %p243_p7 = scmp.lt.s32.totalorder %s2056_s30, 3 }
   0xe   : > { %p2157_p6 = por %p210_p3, %p75_p0  ;;  %s2058_s14 = smov [#allocation5]  }
   0xf   : > { %s2541_s11 = scalar_select %p2152_p4, 1, 0 }
  0x10   : > { %s2542_s12 = scalar_select %p2157_p6, 1, 0 }
  0x11   : > { %p2162_p8 = pnand %p1519_p5, %p243_p7  ;;  %s258_s15 = sshll.u32 %s2058_s14, 4  ;;  %s2166_s15 = int_to_ptr.vmem [resolvable:$true] %s258_s15 }
  0x12   : > { %s2059_s17 = smov [#allocation7]   ;;  %s1868_s21 = scalar_lea.hbm %s2528_s3, 512 }
  0x13   : > { %p1740_p9 = pneg %p2162_p8  ;;  %s274_s18 = sshll.u32 %s2059_s17, 4  ;;  %s2177_s18 = int_to_ptr.vmem [resolvable:$true] %s274_s18 }
  0x14   : > { %p1869_p12 = scmp.ne.s32.totalorder %s2528_s3, %s1868_s21  ;;  %p1875_p5 = scmp.lt.u32.totalorder %s1868_s21, %s2528_s3 }
  0x15   : > { %p2173_p11 = pnand %p1740_p9, %p2534_p1 }
  0x17   : > { %p1870_p13 = pneg %p2173_p11 }
  0x19   : > { %p1871_p0 = pnand %p1870_p13, %p1869_p12 }
  0x1b   : > { %p1872_p3 = pneg %p1871_p0 }
  0x1d   : > { %p1877_p7 = pnand %p1875_p5, %p1872_p3 }
  0x1f   : > { %1880 = shalt.err (!%p1877_p7)
}
  0x20   : > { %s1881_s26 = scalar_lea.vmem %s2166_s15, 512  ;;  %p1889_p2 = scmp.lt.s32.totalorder %s2166_s15, %s2166_s15 }
  0x21   : > { %p1882_p9 = scmp.ne.s32.totalorder %s2166_s15, %s1881_s26  ;;  %p1890_p12 = scmp.lt.s32.totalorder %s1881_s26, %s1881_s26 }
  0x23   : > { %p1884_p10 = pnand %p1882_p9, %p1870_p13  ;;  %p1891_p0 = por %p1890_p12, %p1889_p2 }
  0x25   : > { %p1885_p1 = pneg %p1884_p10 }
  0x27   : > { %p1892_p6 = pnand %p1891_p0, %p1885_p1 }
  0x29   : > { %1895 = shalt.err (!%p1892_p6)
}
  0x2a   : > { %s2535_s10 = smov 128   ;;  %s2536_s14 = smov 8  }
  0x2b   : > { %1743 = dma.hbm_to_vmem [thread:$0]  (!%p2173_p11), %s2528_s3, 512, %s2166_s15, [#allocation6], %s2535_s10, %s2535_s10, %s2536_s14  }
  0x2c   : > { %s1896_s22 = scalar_lea.hbm %s2530_s5, 512 }
  0x2d   : > { %p1897_p1 = scmp.ne.s32.totalorder %s2530_s5, %s1896_s22  ;;  %p1903_p10 = scmp.lt.u32.totalorder %s1896_s22, %s2530_s5 }
  0x2f   : > { %p1899_p2 = pnand %p1897_p1, %p1870_p13 }
  0x31   : > { %p1900_p6 = pneg %p1899_p2 }
  0x33   : > { %p1905_p3 = pnand %p1903_p10, %p1900_p6 }
  0x35   : > { %1908 = shalt.err (!%p1905_p3)
}
  0x36   : > { %s1909_s15 = scalar_lea.vmem %s2177_s18, 512  ;;  %p1917_p12 = scmp.lt.s32.totalorder %s2177_s18, %s2177_s18 }
  0x37   : > { %p1910_p5 = scmp.ne.s32.totalorder %s2177_s18, %s1909_s15  ;;  %p1918_p0 = scmp.lt.s32.totalorder %s1909_s15, %s1909_s15 }
  0x39   : > { %p1912_p7 = pnand %p1910_p5, %p1870_p13  ;;  %p1919_p1 = por %p1918_p0, %p1917_p12 }
  0x3b   : > { %p1913_p9 = pneg %p1912_p7 }
  0x3d   : > { %p1920_p2 = pnand %p1919_p1, %p1913_p9 }
  0x3f   : > { %1923 = shalt.err (!%p1920_p2)
}
  0x40   : > { %1746 = dma.hbm_to_vmem [thread:$0]  (!%p2173_p11), %s2530_s5, 512, %s2177_s18, [#allocation6], %s2535_s10, %s2535_s10, %s2536_s14  }
  0x41   : > { %s2238_s16 = sadd.s32 1, %s2056_s30   ;;  %s62_s20 = sadd.s32 1, %s2052_s29 }
  0x42   : > { %s59_s21 = ssub.s32 %s2056_s30, %s2238_s16  ;;  %p69_p13 = scmp.ne.s32.totalorder %s2052_s29, %s2048_s28 }
  0x43   : > { %p60_p6 = scmp.eq.s32.totalorder %s59_s21, 0  ;;  %p70_p10 = scmp.eq.s32.totalorder %s2056_s30, 0 }
  0x44   : > { %p2545_p3 = scmp.eq.s32.totalorder %s2143_s9, 1  ;;  %p1760_p7 = scmp.lt.s32.totalorder %s2056_s30, 2 }
  0x45   : > { %s2254_s23 = scalar_select %p60_p6, %s2052_s29, %s62_s20  }
  0x46   : > { %p2248_p5 = por %p2545_p3, %p69_p13  ;;  %p71_p9 = por %p70_p10, %p69_p13 }
  0x47   : > { %s299_s24 = sand.u32 1, %s2052_s29   ;;  %s1566_s18 = sshll.u32 %s2056_s30, 8 }
  0x48   : > { %s2546_s22 = scalar_select %p2248_p5, 1, 0 }
  0x49   : > { %s1523_s25 = sshll.u32 %s299_s24, 4  ;;  %s2547_s1 = sld [smem:[#allocation15_spill]] }
  0x4a   : > { %s303_s19 = scalar_lea.vmem [#allocation2], %s1523_s25  ;;  %p2265_p11 = pnand %p1760_p7, %p71_p9 }
  0x4b   : > { %s310_s21 = sshll.u32 %s303_s19, 4  ;;  %s2269_s10 = scalar_lea.sflag [#allocation3], %s299_s24  ;;  %s2263_s21 = int_to_ptr.vmem [resolvable:$true] %s310_s21 }
  0x4c   : > { %p1926_p0 = pneg %p2265_p11 }
  0x4f   : > { %s2261_s17 = scalar_lea.hbm %s2547_s1, %s1566_s18  ;;  %s1929_s26 = scalar_lea.hbm %s2547_s1, 512 }
  0x50   : > { %s1924_s14 = scalar_lea.hbm %s2261_s17, 256  ;;  %p1930_p13 = scmp.lt.u32.totalorder %s2261_s17, %s2547_s1 }
  0x51   : > { %p1925_p12 = scmp.ne.s32.totalorder %s2261_s17, %s1924_s14  ;;  %p1931_p6 = scmp.lt.u32.totalorder %s1929_s26, %s1924_s14 }
  0x52   : > { %p1933_p3 = scmp.lt.u32.totalorder %s1924_s14, %s2261_s17 }
  0x53   : > { %p1927_p1 = pnand %p1926_p0, %p1925_p12  ;;  %p1932_p10 = por %p1931_p6, %p1930_p13 }
  0x55   : > { %p1928_p2 = pneg %p1927_p1  ;;  %p1934_p7 = por %p1933_p3, %p1932_p10 }
  0x57   : > { %p1935_p9 = pnand %p1934_p7, %p1928_p2 }
  0x59   : > { %1938 = shalt.err (!%p1935_p9)
}
  0x5a   : > { %s1939_s24 = scalar_lea.vmem %s2263_s21, 256  ;;  %s2062_s25 = smov [#allocation2]  }
  0x5b   : > { %p1940_p12 = scmp.ne.s32.totalorder %s2263_s21, %s1939_s24  ;;  %s1944_s18 = sshll.u32 %s2062_s25, 4  ;;  %s1945_s18 = int_to_ptr.vmem [resolvable:$false] %s1944_s18 }
  0x5c   : > { %s1946_s15 = scalar_lea.vmem %s1945_s18, 512  ;;  %p1947_p4 = scmp.lt.s32.totalorder %s2263_s21, %s1945_s18 }
  0x5d   : > { %p1942_p1 = pnand %p1940_p12, %p1926_p0  ;;  %p1948_p13 = scmp.lt.s32.totalorder %s1946_s15, %s1939_s24 }
  0x5f   : > { %p1943_p5 = pneg %p1942_p1  ;;  %p1949_p6 = por %p1948_p13, %p1947_p4 }
  0x61   : > { %p1950_p10 = pnand %p1949_p6, %p1943_p5 }
  0x63   : > { %1953 = shalt.err (!%p1950_p10)
}
  0x64   : > { %s2549_s14 = smov 8   ;;  %s2550_s26 = smov 128  }
  0x65   : > { %1750 = dma.hbm_to_vmem [thread:$0]  (!%p2265_p11), %s2261_s17, 256, %s2263_s21, %s2269_s10, %s2550_s26, %s2550_s26, %s2549_s14  }
  0x66   : > { %322 = sbr.rel (%p2162_p8) target bundleno = 1504 (0x5e0), region = 48  ;;  %s2303_s19 = sand.u32 (!%p2162_p8), 1, %s2048_s28  }
  0x67   : > { %s2539_s24 = sshll.u32 (!%p2162_p8), %s2303_s19, 4  ;;  %s325_s25 = scalar_lea.sflag (!%p2162_p8), [#allocation3], %s2303_s19 }
  0x68   : > { %s2309_s20 = scalar_lea.vmem (!%p2162_p8), [#allocation2], %s2539_s24  ;;  %p2551_p4 = scmp.ne.s32.totalorder (!%p2162_p8), %s2541_s11, 0 }
  0x6d   : > { %2027 = dma.done.wait (%p2551_p4), %s325_s25, 256  }
  0x6e   : > { %2029 = vsyncadd (%p2551_p4), %s325_s25, 4294967040  ;;  %p2552_p5 = scmp.eq.s32.totalorder %s2143_s9, 0 }
  0x70   : > { %2031 = dma.done.wait (%p2552_p5), [#allocation6], 1024   ;;  %p2553_p8 = pmov %p2552_p5 }
  0x71   : > { %p379_p11 = scmp.lt.s32.totalorder %s2143_s9, 1  ;;  %v2063_v0 = vmov 0   ;;  %vm402_vm0 = vcmask 261120   ;;  %v388_v1 = vld [vmem:[%s2527_s2] sm:$0xff]  ;;  %v389_v2 = vld [vmem:[%s2527_s2 + $0x8] sm:$0xff]  ;;  %v390_v3 = vld [vmem:[%s2527_s2 + $0x10] sm:$0xff]  ;;  %v532_v16 = vlaneseq }
  0x72   : > { %2033 = vsyncadd (%p2553_p8), [#allocation6], 4294966272  ;;  %1813 = vset.pattern.permute.xlu1 %v2063_v0  ;;  %v1676_v4 = vpack.c.bf16 %v389_v2, %v388_v1  ;;  %v391_v5 = vld [vmem:[%s2527_s2 + $0x18] sm:$0xff]  ;;  %v2064_v9 = vmov 2   ;;  %s2065_s1 = smov 124   ;;  %v2066_v12 = vmov 1  }
  0x73   : > { %s380_s13 = scalar_select %p379_p11, %s2143_s9, 1  ;;  %v1680_v7 = vpack.c.bf16 %v391_v5, %v390_v3  ;;  %1815 = vset.pattern.permute.xlu0 %v2064_v9  ;;  %v2067_v13 = vmov 3   ;;  %v533_v19 = vshrl.u32 %v532_v16, 7  ;;  %vm544_vm1 = vcmask 130048  }
  0x74   : > { %1677 = vmatprep.subr.bf16.mxu1 %v1676_v4  ;;  %s2068_s24 = smov 120   ;;  %s2070_s17 = smov 112   ;;  %vm1078_vm10 = vcmask 64512   ;;  %vm1083_vm11 = vcmask 195584  }
  0x75   : > { %s1567_s10 = sshll.u32 %s380_s13, 4  ;;  %1679 = vmatpush3.bf16.msra.mxu1 %v1676_v4  ;;  %v534_v22 = vsub.s32 0, %v533_v19  ;;  %v662_v23 = vsub.s32 1, %v533_v19  ;;  %v796_v24 = vsub.s32 2, %v533_v19  ;;  %v930_v42 = vsub.s32 3, %v533_v19  ;;  %s1531_s21 = sshll.u32 %s2303_s19, 6 }
  0x76   : > { %s383_s18 = scalar_lea.vmem %s2525_s0, %s1567_s10  ;;  %1681 = vmatprep.subr.bf16.mxu1 %v1680_v7  ;;  %s2069_s10 = smov 104  }
  0x77   : > { %v2336_v6 = vld [vmem:[%s383_s18] sm:$0xff]  ;;  %v2340_v8 = vld [vmem:[%s383_s18 + $0x8] sm:$0xff]  ;;  %s2383_s18 = scalar_lea.vmem [#allocation9], %s1531_s21  ;;  %s2072_s11 = smov 8  }
  0x78   : > { %1616 = vmatprep.mubr.msk.f32.mxu1 %vm402_vm0, %v2336_v6  ;;  %v2354_v3 = vpack.i.bf16 %v2340_v8, %v2336_v6  ;;  %v2359_v4 = vpack.c.bf16 %v2340_v8, %v2336_v6  ;;  %s2073_s15 = smov 24   ;;  %s1569_s14 = sshll.u32 %s2143_s9, 10 }
  0x79   : > { %1683 = vmatpush3.bf16.msra.mxu1 %v1680_v7  ;;  %s2430_s13 = scalar_lea.hbm %s2533_s8, %s1569_s14  ;;  %p2554_p2 = scmp.ne.s32.totalorder %s2546_s22, 0 }
  0x7a   : > { %1685 = vmatprep.subr.bf16.mxu1 %v2359_v4 }
  0x7c   : > { %1617 = vmatmul.mubr.msk.f32.vlgmr.msra.gmra.mrb[0].mxu1 %vm402_vm0, %v2340_v8 }
  0x7d   : > { %1687 = vmatpush3.bf16.msra.mxu1 %v2359_v4 }
 0x14f   : > { %v1618_v10 = vpop.f32.mrb[0].mxu1 }
 0x150   : > { %529 = vperm.xlu1 %1813, %v1618_v10   ;;  %v475_v11 = vpop.f32.mrb[1].mxu1 }
 0x151   : > { %486 = vrot.lane.b32.xlu0 %v475_v11, %s2065_s1 }
 0x154   : > { %1814 = vset.pattern.permute.xlu1 %v2066_v12 }
 0x155   : > { %657 = vperm.xlu1 %1814, %v1618_v10   ;;  %488 = vrot.lane.b32.xlu0 %v1618_v10, %s2065_s1  ;;  %s1382_s1 = sshll.u32 %s2383_s18, 4  ;;  %s2433_s1 = int_to_ptr.vmem [resolvable:$true] %s1382_s1 }
 0x159   : > { %1816 = vset.pattern.permute.xlu1 %v2063_v0  ;;  %791 = vperm.xlu0 %1815, %v1618_v10  }
 0x15a   : > { %525 = vperm.xlu1 %1816, %v475_v11  }
 0x15d   : > { %1817 = vset.pattern.permute.xlu0 %v2066_v12 }
 0x15e   : > { %1818 = vset.pattern.permute.xlu1 %v2064_v9  ;;  %653 = vperm.xlu0 %1817, %v475_v11  }
 0x15f   : > { %787 = vperm.xlu1 %1818, %v475_v11  }
 0x163   : > { %1819 = vset.pattern.permute.xlu1 %v2067_v13 }
 0x164   : > { %921 = vperm.xlu1 %1819, %v475_v11  }
 0x168   : > { %925 = vperm.xlu1 %1819, %v1618_v10  }
 0x1c3   : > { %v487_v14 = vpop.permute.xlu0 %486 }
 0x1c4   : > { %492 = vxpose.xlu0.b32.start [1/2] (short) (narrow) %v487_v14, 8 }
 0x1c7   : > { %v489_v15 = vpop.permute.xlu0 %488 }
 0x1c8   : > { %493 = vxpose.xlu0.b32.end [2/2] (short) (narrow) %v489_v15, 8 }
 0x1cf   : > { %v530_v17 = vpop.permute.xlu1 %529 }
 0x1d4   : > { %v658_v20 = vpop.permute.xlu1 %657 }
 0x1d8   : > { %v792_v18 = vpop.permute.xlu0 %791 }
 0x1d9   : > { %v526_v28 = vpop.permute.xlu1 %525 }
 0x1dd   : > { %v654_v21 = vpop.permute.xlu0 %653 }
 0x1de   : > { %v788_v39 = vpop.permute.xlu1 %787 }
 0x1e3   : > { %v922_v51 = vpop.permute.xlu1 %921 }
 0x1e7   : > { %v926_v56 = vpop.permute.xlu1 %925 }
 0x1f1   : > { %1835 = vset.pattern.permute.xlu0 %v2067_v13 }
 0x244   : > { %v508_v25 = vpop.trf.xlu0 }
 0x245   : > { %v535_v26 = vrot.slane %v508_v25, %v534_v22  ;;  %v663_v27 = vrot.slane %v508_v25, %v662_v23  ;;  %v797_v32 = vrot.slane %v508_v25, %v796_v24  ;;  %v931_v47 = vrot.slane %v508_v25, %v930_v42 }
 0x247   : > { %v537_v29 = vadd.f32 %v535_v26, %v530_v17  ;;  %v536_v30 = vadd.f32 %v535_v26, %v526_v28  ;;  %v664_v31 = vadd.f32 %v663_v27, %v654_v21  ;;  %v665_v33 = vadd.f32 %v663_v27, %v658_v20 }
 0x248   : > { %v798_v45 = vadd.f32 %v797_v32, %v788_v39  ;;  %v799_v50 = vadd.f32 %v797_v32, %v792_v18  ;;  %v932_v55 = vadd.f32 %v931_v47, %v922_v51  ;;  %v933_v60 = vadd.f32 %v931_v47, %v926_v56 }
 0x249   : > { %vm539_vm2 = vcmp.gt.f32.partialorder %v537_v29, 0.0  ;;  %v541_v34 = vmul.f32 0.01, %v537_v29  ;;  %vm538_vm3 = vcmp.gt.f32.partialorder %v536_v30, 0.0  ;;  %v540_v35 = vmul.f32 0.01, %v536_v30 }
 0x24a   : > { %vm666_vm4 = vcmp.gt.f32.partialorder %v664_v31, 0.0  ;;  %v668_v36 = vmul.f32 0.01, %v664_v31  ;;  %v669_v44 = vmul.f32 0.01, %v665_v33  ;;  %vm667_vm5 = vcmp.gt.f32.partialorder %v665_v33, 0.0 }
 0x24b   : > { %v543_v37 = vsel %vm539_vm2, %v537_v29, %v541_v34  ;;  %v542_v38 = vsel %vm538_vm3, %v536_v30, %v540_v35  ;;  %v802_v49 = vmul.f32 0.01, %v798_v45  ;;  %vm800_vm6 = vcmp.gt.f32.partialorder %v798_v45, 0.0 }
 0x24c   : > { %v548_v40 = vsel %vm544_vm1, %v543_v37, -inf  ;;  %v545_v41 = vsel %vm544_vm1, %v542_v38, -inf  ;;  %v670_v43 = vsel %vm666_vm4, %v664_v31, %v668_v36  ;;  %v671_v48 = vsel %vm667_vm5, %v665_v33, %v669_v44 }
 0x24d   : > { %549 = vmax.xlane.f32.xlu0 %v548_v40  ;;  %546 = vmax.xlane.f32.xlu1 %v545_v41  ;;  %v672_v46 = vsel %vm544_vm1, %v670_v43, -inf  ;;  %v675_v52 = vsel %vm544_vm1, %v671_v48, -inf  ;;  %v804_v53 = vsel %vm800_vm6, %v798_v45, %v802_v49  ;;  %v803_v54 = vmul.f32 0.01, %v799_v50 }
 0x24e   : > { %vm801_vm7 = vcmp.gt.f32.partialorder %v799_v50, 0.0  ;;  %v806_v57 = vsel %vm544_vm1, %v804_v53, -inf  ;;  %v936_v59 = vmul.f32 0.01, %v932_v55  ;;  %vm934_vm8 = vcmp.gt.f32.partialorder %v932_v55, 0.0 }
 0x24f   : > { %v805_v58 = vsel %vm801_vm7, %v799_v50, %v803_v54  ;;  %v937_v63 = vmul.f32 0.01, %v933_v60  ;;  %vm935_vm9 = vcmp.gt.f32.partialorder %v933_v60, 0.0 }
 0x250   : > { %v809_v61 = vsel %vm544_vm1, %v805_v58, -inf  ;;  %v938_v62 = vsel %vm934_vm8, %v932_v55, %v936_v59 }
 0x251   : > { %673 = vmax.xlane.f32.xlu1 %v672_v46  ;;  %v940_v0 = vsel %vm544_vm1, %v938_v62, -inf  ;;  %v939_v1 = vsel %vm935_vm9, %v933_v60, %v937_v63 }
 0x252   : > { %v943_v2 = vsel %vm544_vm1, %v939_v1, -inf }
 0x255   : > { %676 = vmax.xlane.f32.xlu1 %v675_v52 }
 0x259   : > { %807 = vmax.xlane.f32.xlu1 %v806_v57 }
 0x25d   : > { %810 = vmax.xlane.f32.xlu1 %v809_v61 }
 0x261   : > { %941 = vmax.xlane.f32.xlu1 %v940_v0 }
 0x265   : > { %944 = vmax.xlane.f32.xlu1 %v943_v2 }
 0x276   : > { %1821 = vrot.lane.b32.xlu1 %v2354_v3, %s2068_s24  ;;  %s1353_s24 = scalar_lea.sflag [#allocation10], %s2303_s19 }
 0x2da   : > { %v550_v5 = vpop.xlane.xlu0 %549  ;;  %v547_v7 = vpop.xlane.xlu1 %546 }
 0x2db   : > { %v552_v9 = vsub.f32 %v543_v37, %v550_v5  ;;  %v551_v10 = vsub.f32 %v542_v38, %v547_v7 }
 0x2dd   : > { %v553_v11 = vmul.f32 1.442695, %v551_v10  ;;  %v555_v12 = vmul.f32 1.442695, %v552_v9 }
 0x2de   : > { %v674_v13 = vpop.xlane.xlu1 %673 }
 0x2df   : > { %v678_v14 = vsub.f32 %v670_v43, %v674_v13  ;;  %1836 = vpow2.f32 %v553_v11 }
 0x2e0   : > { %1838 = vpow2.f32 %v555_v12 }
 0x2e1   : > { %v680_v15 = vmul.f32 1.442695, %v678_v14 }
 0x2e2   : > { %v677_v16 = vpop.xlane.xlu1 %676 }
 0x2e3   : > { %v679_v17 = vsub.f32 %v671_v48, %v677_v16  ;;  %1840 = vpow2.f32 %v680_v15 }
 0x2e5   : > { %v682_v6 = vmul.f32 1.442695, %v679_v17 }
 0x2e6   : > { %v808_v8 = vpop.xlane.xlu1 %807 }
 0x2e7   : > { %v812_v18 = vsub.f32 %v804_v53, %v808_v8  ;;  %1842 = vpow2.f32 %v682_v6 }
 0x2e9   : > { %v1837_v19 = vpop.eup %1836  ;;  %v814_v20 = vmul.f32 1.442695, %v812_v18  ;;  %v386_v18 = vld [vmem:[%s2309_s20] sm:$0xff] }
 0x2ea   : > { %v811_v21 = vpop.xlane.xlu1 %810  ;;  %v557_v23 = vsel %vm544_vm1, %v1837_v19, 0.0  ;;  %v1839_v24 = vpop.eup %1838 }
 0x2eb   : > { %v813_v22 = vsub.f32 %v805_v58, %v811_v21  ;;  %558 = vadd.xlane.f32.xlu1 %v557_v23  ;;  %1844 = vpow2.f32 %v814_v20  ;;  %v560_v28 = vsel %vm544_vm1, %v1839_v24, 0.0  ;;  %v392_v23 = vld [vmem:[#allocation5] sm:$0xff] }
 0x2ed   : > { %v816_v25 = vmul.f32 1.442695, %v813_v22  ;;  %v1841_v29 = vpop.eup %1840 }
 0x2ee   : > { %v942_v26 = vpop.xlane.xlu1 %941  ;;  %v684_v33 = vsel %vm544_vm1, %v1841_v29, 0.0 }
 0x2ef   : > { %1846 = vpow2.f32 %v816_v25  ;;  %v946_v27 = vsub.f32 %v938_v62, %v942_v26  ;;  %561 = vadd.xlane.f32.xlu1 %v560_v28  ;;  %v395_v28 = vld [vmem:[#allocation5 + $0x18] sm:$0xff] }
 0x2f1   : > { %v948_v30 = vmul.f32 1.442695, %v946_v27  ;;  %v1843_v34 = vpop.eup %1842  ;;  %v394_v27 = vld [vmem:[#allocation5 + $0x10] sm:$0xff] }
 0x2f2   : > { %v945_v31 = vpop.xlane.xlu1 %944  ;;  %v687_v37 = vsel %vm544_vm1, %v1843_v34, 0.0 }
 0x2f3   : > { %1848 = vpow2.f32 %v948_v30  ;;  %v947_v32 = vsub.f32 %v939_v1, %v945_v31  ;;  %685 = vadd.xlane.f32.xlu1 %v684_v33  ;;  %v397_v30 = vld [vmem:[#allocation7] sm:$0xff]  ;;  %v398_v31 = vld [vmem:[#allocation7 + $0x8] sm:$0xff] }
 0x2f5   : > { %v950_v35 = vmul.f32 1.442695, %v947_v32  ;;  %v2367_v40 = vpop.eup %1844 }
 0x2f6   : > { %v1822_v36 = vpop.permute.xlu1 %1821  ;;  %v818_v44 = vsel %vm544_vm1, %v2367_v40, 0.0 }
 0x2f7   : > { %1850 = vpow2.f32 %v950_v35  ;;  %v1824_v38 = vunpack.i.h.bf16 %v1822_v36  ;;  %v1823_v39 = vunpack.i.l.bf16 %v1822_v36  ;;  %688 = vadd.xlane.f32.xlu1 %v687_v37  ;;  %v1712_v35 = vpack.c.bf16 %v398_v31, %v397_v30 }
 0x2f9   : > { %v1847_v41 = vpop.eup %1846  ;;  %v1688_v42 = vpack.c.bf16 %v1824_v38, %v1823_v39 }
 0x2fa   : > { %v821_v43 = vsel %vm544_vm1, %v1847_v41, 0.0 }
 0x2fb   : > { %822 = vadd.xlane.f32.xlu0 %v821_v43  ;;  %1689 = vmatprep.subr.bf16.mxu1 %v1688_v42 }
 0x2fc   : > { %819 = vadd.xlane.f32.xlu1 %v818_v44 }
 0x2fd   : > { %v2372_v45 = vpop.eup %1848 }
 0x2fe   : > { %v952_v46 = vsel %vm544_vm1, %v2372_v45, 0.0 }
 0x300   : > { %953 = vadd.xlane.f32.xlu1 %v952_v46 }
 0x301   : > { %v2376_v47 = vpop.eup %1850 }
 0x302   : > { %v955_v48 = vsel %vm544_vm1, %v2376_v47, 0.0 }
 0x303   : > { %956 = vadd.xlane.f32.xlu0 %v955_v48 }
 0x311   : > { %1831 = vrot.lane.b32.xlu1 %v2354_v3, %s2069_s10  ;;  %s1954_s10 = scalar_lea.vmem %s2433_s1, 1024 }
 0x312   : > { %p1955_p0 = scmp.ne.s32.totalorder %s2433_s1, %s1954_s10 }
 0x314   : > { %p1956_p3 = pnand %p1955_p0, %p2554_p2 }
 0x316   : > { %p1957_p7 = pneg %p1956_p3 }
 0x319   : > { %1826 = vrot.lane.b32.xlu0 %v2354_v3, %s2070_s17  ;;  %s2074_s17 = smov [#allocation9]  }
 0x31a   : > { %s1958_s21 = sshll.u32 %s2074_s17, 4  ;;  %s1959_s21 = int_to_ptr.vmem [resolvable:$false] %s1958_s21 }
 0x31b   : > { %p1961_p9 = scmp.lt.s32.totalorder %s2433_s1, %s1959_s21 }
 0x378   : > { %v559_v49 = vpop.xlane.xlu1 %558 }
 0x379   : > { %1852 = vrcp.f32 %v559_v49 }
 0x37c   : > { %v562_v50 = vpop.xlane.xlu1 %561 }
 0x37d   : > { %1854 = vrcp.f32 %v562_v50 }
 0x380   : > { %v686_v51 = vpop.xlane.xlu1 %685 }
 0x381   : > { %1856 = vrcp.f32 %v686_v51 }
 0x383   : > { %v1853_v52 = vpop.eup %1852 }
 0x384   : > { %v689_v53 = vpop.xlane.xlu1 %688  ;;  %v565_v54 = vmul.f32 %v1853_v52, %v1837_v19  ;;  %v387_v19 = vld [vmem:[%s2309_s20 + $0x8] sm:$0xff]  ;;  %s2071_s20 = smov 16   ;;  %v399_v52 = vld [vmem:[#allocation7 + $0x10] sm:$0xff] }
 0x385   : > { %1858 = vrcp.f32 %v689_v53  ;;  %v400_v53 = vld [vmem:[#allocation7 + $0x18] sm:$0xff] }
 0x386   : > { %567 = vst.msk [vmem:[%s2383_s18] sm:$0xff] %vm544_vm1, %v565_v54  ;;  %1623 = vmatprep.mubr.msk.f32.mxu1 %vm544_vm1, %v565_v54 }
 0x387   : > { %v1855_v55 = vpop.eup %1854 }
 0x388   : > { %v823_v56 = vpop.xlane.xlu0 %822  ;;  %v566_v57 = vmul.f32 %v1855_v55, %v1839_v24  ;;  %v393_v24 = vld [vmem:[#allocation5 + $0x8] sm:$0xff] }
 0x389   : > { %1860 = vrcp.f32 %v823_v56  ;;  %v820_v58 = vpop.xlane.xlu1 %819  ;;  %v1700_v26 = vpack.c.bf16 %v393_v24, %v392_v23 }
 0x38a   : > { %1862 = vrcp.f32 %v820_v58  ;;  %568 = vst.msk [vmem:[%s2383_s18 + $0x8] sm:$0xff] %vm544_vm1, %v566_v57  ;;  %1624 = vmatmul.mubr.msk.f32.vlgmr.msra.gmra.mrb[2].mxu1 %vm544_vm1, %v566_v57 }
 0x38b   : > { %v1857_v59 = vpop.eup %1856  ;;  %1691 = vmatpush3.bf16.msra.mxu1 %v1688_v42 }
 0x38c   : > { %v692_v61 = vmul.f32 %v1857_v59, %v1841_v29  ;;  %v1704_v29 = vpack.c.bf16 %v395_v28, %v394_v27 }
 0x38d   : > { %v954_v60 = vpop.xlane.xlu1 %953 }
 0x38e   : > { %1864 = vrcp.f32 %v954_v60  ;;  %1538 = vst.msk [vmem:[%s2383_s18 + $0x10] sm:$0xff] %vm544_vm1, %v692_v61  ;;  %1630 = vmatprep.mubr.msk.f32.mxu1 %vm544_vm1, %v692_v61  ;;  %v1716_v60 = vpack.c.bf16 %v400_v53, %v399_v52 }
 0x38f   : > { %v1859_v62 = vpop.eup %1858 }
 0x390   : > { %v957_v63 = vpop.xlane.xlu0 %956  ;;  %v693_v0 = vmul.f32 %v1859_v62, %v1843_v34 }
 0x391   : > { %1866 = vrcp.f32 %v957_v63  ;;  %v1832_v1 = vpop.permute.xlu1 %1831 }
 0x392   : > { %v1834_v2 = vunpack.i.h.bf16 %v1832_v1  ;;  %v1833_v3 = vunpack.i.l.bf16 %v1832_v1  ;;  %1539 = vst.msk [vmem:[%s2383_s18 + $0x18] sm:$0xff] %vm544_vm1, %v693_v0  ;;  %1631 = vmatmul.mubr.msk.f32.vlgmr.msra.gmra.mrb[4].mxu1 %vm544_vm1, %v693_v0 }
 0x393   : > { %v1861_v5 = vpop.eup %1860 }
 0x394   : > { %v1863_v7 = vpop.eup %1862  ;;  %v1827_v9 = vpop.permute.xlu0 %1826  ;;  %v1696_v10 = vpack.c.bf16 %v1834_v2, %v1833_v3  ;;  %v827_v11 = vmul.f32 %v1861_v5, %v1847_v41 }
 0x395   : > { %v1829_v12 = vunpack.i.h.bf16 %v1827_v9  ;;  %v1828_v13 = vunpack.i.l.bf16 %v1827_v9  ;;  %v826_v14 = vmul.f32 %v1863_v7, %v2367_v40 }
 0x396   : > { %1697 = vmatprep.subr.bf16.mxu1 %v1696_v10  ;;  %1543 = vst.msk [vmem:[%s2383_s18 + $0x28] sm:$0xff] %vm544_vm1, %v827_v11 }
 0x397   : > { %1542 = vst.msk [vmem:[%s2383_s18 + $0x20] sm:$0xff] %vm544_vm1, %v826_v14  ;;  %1637 = vmatprep.mubr.msk.f32.mxu0 %vm544_vm1, %v826_v14  ;;  %v1692_v15 = vpack.c.bf16 %v1829_v12, %v1828_v13  ;;  %1699 = vmatpush3.bf16.msra.mxu1 %v1696_v10 }
 0x398   : > { %v1865_v16 = vpop.eup %1864  ;;  %1709 = vmatprep.subr.bf16.mxu1 %v2359_v4 }
 0x399   : > { %1693 = vmatprep.subr.bf16.mxu0 %v1692_v15  ;;  %v960_v17 = vmul.f32 %v1865_v16, %v2372_v45 }
 0x39a   : > { %1695 = vmatpush3.bf16.msra.mxu0 %v1692_v15 }
 0x39b   : > { %v1867_v6 = vpop.eup %1866  ;;  %1546 = vst.msk [vmem:[%s2383_s18 + $0x30] sm:$0xff] %vm544_vm1, %v960_v17  ;;  %1644 = vmatprep.mubr.msk.f32.mxu1 %vm544_vm1, %v960_v17  ;;  %1701 = vmatprep.subr.bf16.mxu0 %v1700_v26 }
 0x39c   : > { %v961_v8 = vmul.f32 %v1867_v6, %v2376_v47 }
 0x39d   : > { %1638 = vmatmul.mubr.msk.f32.vlgmr.msra.gmra.mrb[0].mxu0 %vm544_vm1, %v827_v11 }
 0x39e   : > { %1547 = vst.msk [vmem:[%s2383_s18 + $0x38] sm:$0xff] %vm544_vm1, %v961_v8  ;;  %1645 = vmatmul.mubr.msk.f32.vlgmr.msra.gmra.mrb[6].mxu1 %vm544_vm1, %v961_v8  ;;  %1703 = vmatpush3.bf16.msra.mxu0 %v1700_v26 }
 0x39f   : > { %1711 = vmatpush3.bf16.msra.mxu1 %v2359_v4  ;;  %1662 = vmatprep.mubr.msk.f32.mxu1 %vm544_vm1, %v386_v18 }
 0x3a0   : > { %1705 = vmatprep.subr.bf16.mxu0 %v1704_v29 }
 0x3a2   : > { %1663 = vmatmul.mubr.msk.f32.vlgmr.msra.gmra.mrb[8].mxu1 %vm544_vm1, %v387_v19  ;;  %1707 = vmatpush3.bf16.msra.mxu0 %v1704_v29 }
 0x3a3   : > { %1713 = vmatprep.subr.bf16.mxu0 %v1712_v35 }
 0x45d   : > { %v1625_v20 = vpop.f32.mrb[2].mxu1 }
 0x45e   : > { %v641_v21 = vpop.f32.mrb[3].mxu1  ;;  %v651_v48 = vmax.f32 %v1625_v20, 0.0 }
 0x45f   : > { %v650_v46 = vmax.f32 %v641_v21, 0.0 }
 0x465   : > { %v1632_v22 = vpop.f32.mrb[4].mxu1 }
 0x466   : > { %v775_v25 = vpop.f32.mrb[5].mxu1  ;;  %v785_v38 = vmax.f32 %v1632_v22, 0.0 }
 0x467   : > { %v784_v40 = vmax.f32 %v775_v25, 0.0 }
 0x470   : > { %v1639_v4 = vpop.f32.mrb[0].mxu0 }
 0x471   : > { %v919_v32 = vmax.f32 %v1639_v4, 0.0  ;;  %v909_v33 = vpop.f32.mrb[1].mxu0  ;;  %v1646_v34 = vpop.f32.mrb[6].mxu1 }
 0x472   : > { %v918_v36 = vmax.f32 %v909_v33, 0.0  ;;  %v1043_v37 = vpop.f32.mrb[7].mxu1  ;;  %v1053_v42 = vmax.f32 %v1646_v34, 0.0 }
 0x473   : > { %1066 = vrot.lane.b32.xlu0 %v919_v32, %s2071_s20  ;;  %v1052_v43 = vmax.f32 %v1043_v37, 0.0 }
 0x474   : > { %1064 = vrot.lane.b32.xlu1 %v918_v36, %s2071_s20  ;;  %s1960_s20 = scalar_lea.vmem %s1959_s21, 2048 }
 0x475   : > { %v1664_v39 = vpop.f32.mrb[8].mxu1  ;;  %p1962_p12 = scmp.lt.s32.totalorder %s1960_s20, %s1954_s10 }
 0x476   : > { %v1245_v41 = vpop.f32.mrb[9].mxu1  ;;  %v1255_v62 = vmax.f32 %v1664_v39, 0.0 }
 0x477   : > { %1058 = vrot.lane.b32.xlu0 %v785_v38, %s2072_s11  ;;  %v1254_v57 = vmax.f32 %v1245_v41, 0.0  ;;  %p1963_p1 = por %p1962_p12, %p1961_p9 }
 0x478   : > { %1056 = vrot.lane.b32.xlu1 %v784_v40, %s2072_s11 }
 0x479   : > { %p1964_p13 = pnand %p1963_p1, %p1957_p7 }
 0x47b   : > { %1074 = vrot.lane.b32.xlu0 %v1053_v42, %s2073_s15 }
 0x47c   : > { %1072 = vrot.lane.b32.xlu1 %v1052_v43, %s2073_s15 }
 0x4e5   : > { %v1067_v44 = vpop.permute.xlu0 %1066 }
 0x4e6   : > { %v1065_v45 = vpop.permute.xlu1 %1064 }
 0x4e9   : > { %v1059_v47 = vpop.permute.xlu0 %1058 }
 0x4ea   : > { %v1057_v49 = vpop.permute.xlu1 %1056  ;;  %v1080_v51 = vsel %vm1078_vm10, %v651_v48, %v1059_v47 }
 0x4eb   : > { %v1079_v50 = vsel %vm1078_vm10, %v650_v46, %v1057_v49  ;;  %v1082_v58 = vsel %vm544_vm1, %v1080_v51, %v1067_v44 }
 0x4ec   : > { %v1081_v55 = vsel %vm544_vm1, %v1079_v50, %v1065_v45 }
 0x4ed   : > { %v1075_v54 = vpop.permute.xlu0 %1074 }
 0x4ee   : > { %v1073_v56 = vpop.permute.xlu1 %1072  ;;  %v1085_v61 = vsel %vm1083_vm11, %v1082_v58, %v1075_v54 }
 0x4ef   : > { %v1084_v59 = vsel %vm1083_vm11, %v1081_v55, %v1073_v56 }
 0x4f0   : > { %1655 = vmatprep.mubr.msk.f32.mxu0 %vm402_vm0, %v1084_v59 }
 0x4f1   : > { %1656 = vmatmul.mubr.msk.f32.vlgmr.msra.gmra.mrb[2].mxu0 %vm402_vm0, %v1085_v61 }
 0x4f2   : > { %1715 = vmatpush3.bf16.msra.mxu0 %v1712_v35  ;;  %1673 = vmatprep.mubr.msk.f32.mxu0 %vm402_vm0, %v1254_v57 }
 0x4f3   : > { %1717 = vmatprep.subr.bf16.mxu0 %v1716_v60 }
 0x4f6   : > { %1719 = vmatpush3.bf16.msra.mxu0 %v1716_v60 }
 0x4f9   : > { %1674 = vmatmul.mubr.msk.f32.vlgmr.msra.gmra.mrb[2].mxu0 %vm402_vm0, %v1255_v62 }
 0x4fa   : > { %1967 = shalt.err (!%p1964_p13)
}
 0x4fb   : > { %s1968_s18 = scalar_lea.hbm %s2430_s13, 1024  ;;  %s1972_s26 = scalar_lea.hbm %s2533_s8, 2048 }
 0x4fc   : > { %p1969_p6 = scmp.ne.s32.totalorder %s2430_s13, %s1968_s18  ;;  %p1973_p5 = scmp.lt.u32.totalorder %s2430_s13, %s2533_s8 }
 0x4fd   : > { %p1974_p8 = scmp.lt.u32.totalorder %s1972_s26, %s1968_s18  ;;  %p1976_p0 = scmp.lt.u32.totalorder %s1968_s18, %s2430_s13 }
 0x4fe   : > { %p1970_p10 = pnand %p1969_p6, %p2554_p2 }
 0x4ff   : > { %p1975_p11 = por %p1974_p8, %p1973_p5 }
 0x500   : > { %p1971_p4 = pneg %p1970_p10 }
 0x501   : > { %p1977_p3 = por %p1976_p0, %p1975_p11 }
 0x503   : > { %p1978_p7 = pnand %p1977_p3, %p1971_p4 }
 0x505   : > { %1981 = shalt.err (!%p1978_p7)
}
 0x506   : > { %s2075_s10 = smov 128   ;;  %v1550_v63 = vld [vmem:[%s2529_s4] ss:$0 sm:$0xff]  ;;  %s1568_s14 = sshll.u32 %s2143_s9, 8 }
 0x507   : > { %1737 = dma.vmem_to_hbm [thread:$0]  (%p2554_p2), %s2433_s1, 1024, %s2430_s13, %s1353_s24, %s2075_s10, %s2075_s10, %s2072_s11  }
 0x508   : > { %v1555_v1 = vld [vmem:[%s2531_s6] ss:$0 sm:$0xff]  ;;  %s2555_s26 = sshll.u32 %s2303_s19, 4  ;;  %s2474_s24 = scalar_lea.hbm %s2532_s7, %s1568_s14 }
 0x509   : > { %s371_s25 = scalar_lea.vmem [#allocation8], %s2555_s26  ;;  %s1348_s9 = scalar_lea.sflag [#allocation4], %s2303_s19 }
 0x50a   : > { %s1366_s17 = sshll.u32 %s371_s25, 4  ;;  %s2076_s20 = smov [#allocation8]   ;;  %s2476_s17 = int_to_ptr.vmem [resolvable:$true] %s1366_s17 }
 0x50b   : > { %s1982_s21 = scalar_lea.vmem %s2476_s17, 256  ;;  %s1986_s18 = sshll.u32 %s2076_s20, 4  ;;  %s1987_s18 = int_to_ptr.vmem [resolvable:$false] %s1986_s18 }
 0x50c   : > { %p1983_p9 = scmp.ne.s32.totalorder %s2476_s17, %s1982_s21  ;;  %s1988_s15 = scalar_lea.vmem %s1987_s18, 512 }
 0x50d   : > { %p1989_p13 = scmp.lt.s32.totalorder %s2476_s17, %s1987_s18  ;;  %p1990_p6 = scmp.lt.s32.totalorder %s1988_s15, %s1982_s21 }
 0x50e   : > { %p1984_p12 = pnand %p1983_p9, %p2554_p2 }
 0x50f   : > { %p1991_p10 = por %p1990_p6, %p1989_p13 }
 0x510   : > { %p1985_p1 = pneg %p1984_p12 }
 0x512   : > { %p1992_p4 = pnand %p1991_p10, %p1985_p1 }
 0x5cc   : > { %v1675_v0 = vpop.f32.mrb[2].mxu0 }
 0x5cd   : > { %v1720_v2 = vadd.f32 %v1675_v0, %v1550_v63  ;;  %v1334_v3 = vpop.f32.mrb[3].mxu0 }
 0x5ce   : > { %v1722_v5 = vadd.f32 %v1550_v63, %v1334_v3 }
 0x5cf   : > { %v1721_v7 = vadd.f32 %v1720_v2, %v1555_v1 }
 0x5d0   : > { %v1723_v9 = vadd.f32 %v1722_v5, %v1555_v1 }
 0x5d1   : > { %1346 = vst.msk [vmem:[%s371_s25 + $0x8] sm:$0xff] %vm402_vm0, %v1721_v7 }
 0x5d2   : > { %1345 = vst.msk [vmem:[%s371_s25] sm:$0xff] %vm402_vm0, %v1723_v9 }
 0x5d3   : > { %1995 = shalt.err (!%p1992_p4)
}
 0x5d4   : > { %s1996_s14 = scalar_lea.hbm %s2474_s24, 256  ;;  %s2000_s13 = scalar_lea.hbm %s2532_s7, 512 }
 0x5d5   : > { %p1997_p5 = scmp.ne.s32.totalorder %s2474_s24, %s1996_s14  ;;  %p2001_p0 = scmp.lt.u32.totalorder %s2474_s24, %s2532_s7 }
 0x5d6   : > { %p2002_p3 = scmp.lt.u32.totalorder %s2000_s13, %s1996_s14  ;;  %p2004_p9 = scmp.lt.u32.totalorder %s1996_s14, %s2474_s24 }
 0x5d7   : > { %p1998_p8 = pnand %p1997_p5, %p2554_p2 }
 0x5d8   : > { %p2003_p7 = por %p2002_p3, %p2001_p0 }
 0x5d9   : > { %p1999_p11 = pneg %p1998_p8 }
 0x5da   : > { %p2005_p12 = por %p2004_p9, %p2003_p7 }
 0x5dc   : > { %p2006_p1 = pnand %p2005_p12, %p1999_p11 }
 0x5de   : > { %2009 = shalt.err (!%p2006_p1)
}
 0x5df   : > { %1736 = dma.vmem_to_hbm [thread:$0]  (%p2554_p2), %s2476_s17, 256, %s2474_s24, %s1348_s9, %s2075_s10, %s2075_s10, %s2072_s11  }
 0x5e0 PF: > { %s1397_s21 = sand.u32 1, %s2044_s27   ;;  %p2556_p13 = scmp.ne.s32.totalorder %s2542_s12, 0 }
 0x5e1   : > { %p2557_p6 = scmp.ge.s32.totalorder %s2056_s30, 2  ;;  %s1398_s18 = scalar_lea.sflag [#allocation4], %s1397_s21 }
 0x5e3   : > { %p1752_p10 = pnand %p2557_p6, %p2556_p13 }
 0x5e5   : > { %2035 = dma.done.wait (!%p1752_p10), %s1398_s18, 256  }
 0x5e6   : > { %2037 = vsyncadd (!%p1752_p10), %s1398_s18, 4294967040  ;;  %s1407_s22 = scalar_lea.sflag [#allocation10], %s1397_s21 }
 0x5e7   : > { %2039 = dma.done.wait (!%p1752_p10), %s1407_s22, 1024  }
 0x5e8   : > { %2041 = vsyncadd (!%p1752_p10), %s1407_s22, 4294966272  ;;  %p26_p2 = scmp.ge.s32.totalorder %s2238_s16, 4   ;;  %s2558_s27 = smov %s2048_s28 }
 0x5e9   : > { %s2559_s28 = smov %s2052_s29  ;;  %s2560_s29 = smov %s2254_s23 }
 0x5ea   : > { %s2561_s30 = smov %s2238_s16  ;;  %28 = sbr.rel (!%p26_p2) target bundleno = 10 (0xa), region = 124 }
 0x5f1   :  { %1412 = vsyncpa [#allocation3], 1 }
 0x5f2   :  { %1414 = vsyncpa [#allocation3 + $0x1], 1 }
 0x5f3   :  { %1415 = vsyncpa [#allocation6], 1 }
 0x5f4   :  { %1416 = vsyncpa [#allocation4], 1 }
 0x5f5   :  { %1418 = vsyncpa [#allocation4 + $0x1], 1 }
 0x5f6   :  { %1419 = vsyncpa [#allocation10], 1 }
 0x5f7   :  { %1421 = vsyncpa [#allocation10 + $0x1], 1 }

</bundles_post_ra>
